<compile_context>
chip_gen: v7x
topology: tpu7x:2x2x1
jax: 0.10.0
libtpu: 0.0.40
codegen_flags: <defaults>
</compile_context>

<pallas_src>
import jax
import jax.numpy as jnp
from jax.experimental import pallas as pl
from jax.experimental.pallas import tpu as pltpu

_LANES = 128
_PARTIAL_ROWS = 8  # one f32 vreg of sublanes per partial output


def _partials(pred_ref, target_ref):
    """(8,128) partial sums of |t-p|*(t>0) and of (t>0) for the current tile."""
    t = target_ref[...].astype(jnp.float32)
    p = pred_ref[...].astype(jnp.float32)
    mask = t > 0.0
    abs_diff = jnp.where(mask, jnp.abs(t - p), 0.0)
    maskf = mask.astype(jnp.float32)

    tile_rows, lanes = t.shape
    g = tile_rows // _PARTIAL_ROWS
    # Group-sum over sublane groups of 8: pure VPU vreg adds (no XLU, no
    # scalar RMW); each result is one full (8, 128) vreg -> unmasked store.
    s = abs_diff.reshape(g, _PARTIAL_ROWS, lanes).sum(axis=0)
    c = maskf.reshape(g, _PARTIAL_ROWS, lanes).sum(axis=0)
    return s, c


def _masked_l1_kernel_blocks(pred_ref, target_ref, sum_ref, cnt_ref):
    """Per-block partial outputs (megacore-friendly 'parallel' layout)."""
    s, c = _partials(pred_ref, target_ref)
    sum_ref[...] = s
    cnt_ref[...] = c


def _masked_l1_kernel_acc(pred_ref, target_ref, sum_ref, cnt_ref):
    """Single resident accumulator ('arbitrary' grid) for single-TC chips."""

    @pl.when(pl.program_id(0) == 0)
    def _():
        sum_ref[...] = jnp.zeros_like(sum_ref)
        cnt_ref[...] = jnp.zeros_like(cnt_ref)

    s, c = _partials(pred_ref, target_ref)
    sum_ref[...] += s
    cnt_ref[...] += c


def _chip_plan():
    """Returns (block byte budget per input, vmem_limit_bytes or None, #TCs)."""
    try:
        kind = jax.devices()[0].device_kind.lower()
    except Exception:  # pragma: no cover - defensive
        kind = ""
    if "v7" in kind or "7x" in kind:
        # v7x: ~3.2 TB/s HBM, 64 MiB VMEM/TC, 2 TCs. 8 MiB blocks need the
        # scoped-VMEM limit raised (2 inputs x 2 buffers x 8 MiB = 32 MiB).
        return 8 << 20, 44 << 20, 2
    if "v6" in kind:
        # v6e: 4 MiB blocks -> 16 MiB double-buffered, under 32 MiB default.
        return 4 << 20, None, 1
    # v5e / unknown: stay safely within the 16 MiB scoped-VMEM default.
    return 2 << 20, None, 1


@jax.jit
def masked_l1_loss(pred, target):
    assert pred.ndim == target.ndim, "inconsistent dimensions"
    assert pred.shape == target.shape, "inconsistent shapes"

    n = pred.size
    flat_p = pred.reshape(-1)
    flat_t = target.reshape(-1)

    p_item = int(jnp.dtype(pred.dtype).itemsize)
    t_item = int(jnp.dtype(target.dtype).itemsize)
    # Sublane multiple of the block's second-minor dim follows dtype packing
    # (f32: 8, bf16/f16: 16, int8/fp8: 32); take strictest of the two inputs.
    sub = 8 * max(1, 4 // min(p_item, t_item))

    budget_bytes, vmem_limit, n_cores = _chip_plan()
    rows_total = n // _LANES
    aligned_rows = (rows_total // sub) * sub

    num_blocks = 0
    tile_rows = 0
    if aligned_rows > 0:
        # Byte-budget-driven block size (dtype-aware), pinned at the maximum:
        # the (< one block) remainder goes to the jnp tail instead of
        # shrinking blocks (keeps per-step overhead amortized at cliff sizes).
        budget_rows = max(
            sub, ((budget_bytes // (_LANES * max(p_item, t_item))) // sub) * sub
        )
        tile_rows = min(budget_rows, aligned_rows)
        num_blocks = rows_total // tile_rows
        # Megacore balance (v7x): make sure both TensorCores get a block when
        # the input would otherwise fit into fewer blocks than cores.
        if n_cores > 1 and num_blocks < n_cores and aligned_rows >= n_cores * sub:
            tile_rows = ((aligned_rows // n_cores) // sub) * sub
            num_blocks = n_cores

    if num_blocks > 0:
        rows_main = num_blocks * tile_rows
        n_main = rows_main * _LANES
        p2 = flat_p[:n_main].reshape(rows_main, _LANES)
        t2 = flat_t[:n_main].reshape(rows_main, _LANES)

        if n_cores > 1:
            # Per-block partial slots; grid axis "parallel" -> cores split it.
            kernel = _masked_l1_kernel_blocks
            out_shape = (
                jax.ShapeDtypeStruct((num_blocks, _PARTIAL_ROWS, _LANES), jnp.float32),
                jax.ShapeDtypeStruct((num_blocks, _PARTIAL_ROWS, _LANES), jnp.float32),
            )
            out_specs = (
                pl.BlockSpec((None, _PARTIAL_ROWS, _LANES), lambda i: (i, 0, 0)),
                pl.BlockSpec((None, _PARTIAL_ROWS, _LANES), lambda i: (i, 0, 0)),
            )
            semantics = ("parallel",)
            out_bytes = 2 * num_blocks * _PARTIAL_ROWS * _LANES * 4
        else:
            # Single resident accumulator; no per-block writeback.
            kernel = _masked_l1_kernel_acc
            out_shape = (
                jax.ShapeDtypeStruct((_PARTIAL_ROWS, _LANES), jnp.float32),
                jax.ShapeDtypeStruct((_PARTIAL_ROWS, _LANES), jnp.float32),
            )
            out_specs = (
                pl.BlockSpec((_PARTIAL_ROWS, _LANES), lambda i: (0, 0)),
                pl.BlockSpec((_PARTIAL_ROWS, _LANES), lambda i: (0, 0)),
            )
            semantics = ("arbitrary",)
            out_bytes = 2 * _PARTIAL_ROWS * _LANES * 4

        compiler_kwargs = dict(dimension_semantics=semantics)
        if vmem_limit is not None:
            compiler_kwargs["vmem_limit_bytes"] = vmem_limit

        sum_out, cnt_out = pl.pallas_call(
            kernel,
            out_shape=out_shape,
            grid_spec=pltpu.PrefetchScalarGridSpec(
                num_scalar_prefetch=0,
                grid=(num_blocks,),
                in_specs=[
                    pl.BlockSpec((tile_rows, _LANES), lambda i: (i, 0)),
                    pl.BlockSpec((tile_rows, _LANES), lambda i: (i, 0)),
                ],
                out_specs=out_specs,
            ),
            compiler_params=pltpu.CompilerParams(**compiler_kwargs),
            cost_estimate=pl.CostEstimate(
                flops=5 * n_main,
                transcendentals=0,
                bytes_accessed=n_main * (p_item + t_item) + out_bytes,
            ),
        )(p2, t2)
        main_sum = jnp.sum(sum_out)
        main_cnt = jnp.sum(cnt_out)
    else:
        # Too small to form even one (sub, 128) tile; handled entirely below.
        n_main = 0
        main_sum = jnp.float32(0.0)
        main_cnt = jnp.float32(0.0)

    if n_main < n:
        # Tail (< one block): cheap plain-jnp reduction, no padding.
        tp = flat_p[n_main:].astype(jnp.float32)
        tt = flat_t[n_main:].astype(jnp.float32)
        tmask = tt > 0.0
        total_sum = main_sum + jnp.sum(jnp.where(tmask, jnp.abs(tt - tp), 0.0))
        total_cnt = main_cnt + jnp.sum(tmask.astype(jnp.float32))
    else:
        total_sum = main_sum
        total_cnt = main_cnt

    # Mean over valid elements (0/0 -> NaN matches torch .mean() of an empty
    # tensor when there is no valid element).
    return (total_sum / total_cnt).astype(jnp.float32)


def masked_l1_loss_ref(pred, target):
    mask = target > 0
    diff = jnp.where(mask, jnp.abs(target - pred), 0.0)
    return jnp.sum(diff) / jnp.sum(mask.astype(jnp.float32))


if __name__ == "__main__":
    key = jax.random.PRNGKey(0)
    k1, k2 = jax.random.split(key)

    # Small NCHW shapes consistent with a depth-prediction style loss.
    shape = (2, 4, 16, 16)
    pred = jax.random.normal(k1, shape, dtype=jnp.float32)
    # target: mix of positive (valid) and non-positive (invalid) entries.
    target = jax.random.normal(k2, shape, dtype=jnp.float32)

    loss = masked_l1_loss(pred, target)
    loss = jax.block_until_ready(loss)

    ref = masked_l1_loss_ref(pred, target)
    assert jnp.allclose(loss, ref, rtol=1e-5, atol=1e-6), (loss, ref)

    print("KERNEL_OK")
</pallas_src>

<mosaic_0001>
module attributes {stable_mosaic.version = 11 : i64} {
  func.func @_masked_l1_kernel_acc(%arg0: i32, %arg1: memref<16x128xf32, #tpu.memory_space<vmem>>, %arg2: memref<16x128xf32, #tpu.memory_space<vmem>>, %arg3: memref<8x128xf32, #tpu.memory_space<vmem>>, %arg4: memref<8x128xf32, #tpu.memory_space<vmem>>) attributes {dimension_semantics = [#tpu.dimension_semantics<arbitrary>], iteration_bounds = array<i64: 1>, scalar_prefetch = 0 : i64, scratch_operands = 0 : i64, tpu.core_type = #tpu.core_type<tc>, window_params = [{transform_indices = @transform_0, window_bounds = array<i64: 16, 128>}, {transform_indices = @transform_1, window_bounds = array<i64: 16, 128>}, {pipeline_mode = #tpu.pipeline_mode<synchronous>, transform_indices = @transform_2, window_bounds = array<i64: 8, 128>}, {pipeline_mode = #tpu.pipeline_mode<synchronous>, transform_indices = @transform_3, window_bounds = array<i64: 8, 128>}]} {
    %c0_i32 = arith.constant 0 : i32
    %0 = arith.cmpi eq, %arg0, %c0_i32 : i32
    %1 = arith.extui %0 : i1 to i32
    %c0_i32_0 = arith.constant 0 : i32
    %2 = arith.cmpi ne, %1, %c0_i32_0 : i32
    scf.if %2 {
      %cst_15 = arith.constant 0.000000e+00 : f32
      %23 = vector.broadcast %cst_15 : f32 to vector<8x128xf32>
      %c0_16 = arith.constant 0 : index
      %c0_17 = arith.constant 0 : index
      %24 = vector.load %arg3[%c0_16, %c0_17] : memref<8x128xf32, #tpu.memory_space<vmem>>, vector<8x128xf32>
      tpu.vector_store %arg3[%c0_16, %c0_17], %23 {strides = array<i32>} : memref<8x128xf32, #tpu.memory_space<vmem>>, vector<8x128xf32>,
      %cst_18 = arith.constant 0.000000e+00 : f32
      %25 = vector.broadcast %cst_18 : f32 to vector<8x128xf32>
      %c0_19 = arith.constant 0 : index
      %c0_20 = arith.constant 0 : index
      %26 = vector.load %arg4[%c0_19, %c0_20] : memref<8x128xf32, #tpu.memory_space<vmem>>, vector<8x128xf32>
      tpu.vector_store %arg4[%c0_19, %c0_20], %25 {strides = array<i32>} : memref<8x128xf32, #tpu.memory_space<vmem>>, vector<8x128xf32>,
    } else {
    }
    %c0 = arith.constant 0 : index
    %c0_1 = arith.constant 0 : index
    %3 = vector.load %arg2[%c0, %c0_1] : memref<16x128xf32, #tpu.memory_space<vmem>>, vector<16x128xf32>
    %c0_2 = arith.constant 0 : index
    %c0_3 = arith.constant 0 : index
    %4 = vector.load %arg1[%c0_2, %c0_3] : memref<16x128xf32, #tpu.memory_space<vmem>>, vector<16x128xf32>
    %cst = arith.constant 0.000000e+00 : f32
    %5 = vector.broadcast %cst : f32 to vector<16x128xf32>
    %6 = arith.cmpf ogt, %3, %5 : vector<16x128xf32>
    %7 = arith.subf %3, %4 : vector<16x128xf32>
    %8 = math.absf %7 : vector<16x128xf32>
    %cst_4 = arith.constant 0.000000e+00 : f32
    %9 = vector.broadcast %cst_4 : f32 to vector<16x128xf32>
    %10 = arith.select %6, %8, %9 : vector<16x128xi1>, vector<16x128xf32>
    %11 = arith.extui %6 : vector<16x128xi1> to vector<16x128xi32>
    %12 = arith.sitofp %11 : vector<16x128xi32> to vector<16x128xf32>
    %13 = vector.shape_cast %10 : vector<16x128xf32> to vector<2x8x128xf32>
    %cst_5 = arith.constant dense<0.000000e+00> : vector<8x128xf32>
    %14 = vector.multi_reduction <add>, %13, %cst_5 [0] : vector<2x8x128xf32> to vector<8x128xf32>
    %15 = vector.shape_cast %12 : vector<16x128xf32> to vector<2x8x128xf32>
    %cst_6 = arith.constant dense<0.000000e+00> : vector<8x128xf32>
    %16 = vector.multi_reduction <add>, %15, %cst_6 [0] : vector<2x8x128xf32> to vector<8x128xf32>
    %c0_7 = arith.constant 0 : index
    %c0_8 = arith.constant 0 : index
    %17 = vector.load %arg3[%c0_7, %c0_8] : memref<8x128xf32, #tpu.memory_space<vmem>>, vector<8x128xf32>
    %18 = arith.addf %17, %14 : vector<8x128xf32>
    %c0_9 = arith.constant 0 : index
    %c0_10 = arith.constant 0 : index
    %19 = vector.load %arg3[%c0_9, %c0_10] : memref<8x128xf32, #tpu.memory_space<vmem>>, vector<8x128xf32>
    tpu.vector_store %arg3[%c0_9, %c0_10], %18 {strides = array<i32>} : memref<8x128xf32, #tpu.memory_space<vmem>>, vector<8x128xf32>,
    %c0_11 = arith.constant 0 : index
    %c0_12 = arith.constant 0 : index
    %20 = vector.load %arg4[%c0_11, %c0_12] : memref<8x128xf32, #tpu.memory_space<vmem>>, vector<8x128xf32>
    %21 = arith.addf %20, %16 : vector<8x128xf32>
    %c0_13 = arith.constant 0 : index
    %c0_14 = arith.constant 0 : index
    %22 = vector.load %arg4[%c0_13, %c0_14] : memref<8x128xf32, #tpu.memory_space<vmem>>, vector<8x128xf32>
    tpu.vector_store %arg4[%c0_13, %c0_14], %21 {strides = array<i32>} : memref<8x128xf32, #tpu.memory_space<vmem>>, vector<8x128xf32>,
    return
  }
  func.func @transform_0(%arg0: i32) -> (i32, i32) {
    %c0_i32 = arith.constant 0 : i32
    %c0_i32_0 = arith.constant 0 : i32
    return %arg0, %c0_i32 : i32, i32
  }
  func.func @transform_1(%arg0: i32) -> (i32, i32) {
    %c0_i32 = arith.constant 0 : i32
    %c0_i32_0 = arith.constant 0 : i32
    return %arg0, %c0_i32 : i32, i32
  }
  func.func @transform_2(%arg0: i32) -> (i32, i32) {
    %c0_i32 = arith.constant 0 : i32
    %c0_i32_0 = arith.constant 0 : i32
    %c0_i32_1 = arith.constant 0 : i32
    return %c0_i32, %c0_i32_0 : i32, i32
  }
  func.func @transform_3(%arg0: i32) -> (i32, i32) {
    %c0_i32 = arith.constant 0 : i32
    %c0_i32_0 = arith.constant 0 : i32
    %c0_i32_1 = arith.constant 0 : i32
    return %c0_i32, %c0_i32_0 : i32, i32
  }
}

</mosaic_0001>

<bundles_post_ra>
// kernel: masked_l1_loss.1
= control target key start
LH: loop header
LB: loop body
LE: loop exit
PB: predicated region body
PF: predicated region fallthrough
CT: control target
= control target key end

     0   :  { %v54_v6 = vmov 0.0   ;;  %s93_s0 = inlined_call_operand.vmem [shape: f32[16,128], index: 0, kind: input, shape index: {}]   ;;  %s94_s1 = inlined_call_operand.vmem [shape: f32[16,128], index: 1, kind: input, shape index: {}]   ;;  %s95_s3 = inlined_call_operand.vmem [shape: f32[8,128], index: 3, kind: output, shape index: {1}]   ;;  %s96_s2 = inlined_call_operand.vmem [shape: f32[8,128], index: 2, kind: output, shape index: {0}]  }
   0x1   :  { %v19_v0 = vld [vmem:[%s94_s1] sm:$0xff]  ;;  %v20_v1 = vld [vmem:[%s94_s1 + $0x8] sm:$0xff] }
   0x2   :  { %v21_v2 = vld [vmem:[%s93_s0] sm:$0xff]  ;;  %v22_v3 = vld [vmem:[%s93_s0 + $0x8] sm:$0xff]  ;;  %vm23_vm0 = vcmp.gt.f32.partialorder %v19_v0, 0.0  ;;  %vm24_vm1 = vcmp.gt.f32.partialorder %v20_v1, 0.0 }
   0x3   :  { %v25_v4 = vsub.f32 %v19_v0, %v21_v2  ;;  %v26_v5 = vsub.f32 %v20_v1, %v22_v3  ;;  %v51_v7 = vsel %vm23_vm0, 1.0, %v54_v6  ;;  %v52_v8 = vsel %vm24_vm1, 1.0, %v54_v6 }
   0x4   :  { %v36_v10 = vadd.f32 %v52_v8, %v51_v7 }
   0x5   :  { %v27_v9 = vand.u32 2147483647, %v25_v4  ;;  %v28_v11 = vand.u32 2147483647, %v26_v5 }
   0x6   :  { %42 = vst [vmem:[%s95_s3] sm:$0xff] %v36_v10 }
   0x7   :  { %v29_v12 = vsel %vm23_vm0, %v27_v9, 0.0  ;;  %v30_v13 = vsel %vm24_vm1, %v28_v11, 0.0 }
   0x8   :  { %v35_v14 = vadd.f32 %v30_v13, %v29_v12 }
   0xa   :  { %39 = vst [vmem:[%s96_s2] sm:$0xff] %v35_v14 }

</bundles_post_ra>
